<compile_context>
chip_gen: v6e
topology: v6e:2x2x1
jax: 0.10.0
libtpu: 0.0.40
codegen_flags: <defaults>
</compile_context>

<pallas_src>
import functools

import jax
import jax.numpy as jnp
from jax.experimental import pallas as pl
from jax.experimental.pallas import tpu as pltpu


def encoder_block_kernel(xq_ref, xf_ref, wq_ref, wk_ref, wv_ref, bv_ref,
                         mg_ref, mb_ref, w1_ref, b1_ref, w2_ref, b2_ref,
                         fg_ref, fb_ref, o_ref, attn_ref,
                         *, num_heads, head_size, eps):
    mm_dtype = wq_ref.dtype          # MXU operand dtype (bf16 when activations are bf16)
    x_q = xq_ref[...]                # (TQ, D) query rows handled by this grid step
    x_f = xf_ref[...]                # (S, D)  full sequence (keys / values)
    scale = head_size ** -0.5

    # ---- fused, lane-dense QKV projections: one (·,D)@(D,D) matmul each ----
    q = jnp.dot(x_q, wq_ref[...], preferred_element_type=jnp.float32) * scale
    k = jnp.dot(x_f, wk_ref[...], preferred_element_type=jnp.float32)
    v = jnp.dot(x_f, wv_ref[...], preferred_element_type=jnp.float32) \
        + bv_ref[...].astype(jnp.float32)
    q = q.astype(mm_dtype)
    k = k.astype(mm_dtype)
    v = v.astype(mm_dtype)

    trans_b = (((1,), (1,)), ((), ()))   # contract last dims: q @ k^T without materializing k.T

    # ---- per-head attention; each head's output goes straight into a lane slice of
    #      the (TQ, D) f32 VMEM scratch (no concatenate of lane-partial pieces) ----
    for h in range(num_heads):           # static unroll, H is small
        lo, hi = h * head_size, (h + 1) * head_size
        q_h, k_h, v_h = q[:, lo:hi], k[:, lo:hi], v[:, lo:hi]
        s = jax.lax.dot_general(q_h, k_h, trans_b,
                                preferred_element_type=jnp.float32)      # (TQ, S)
        s = s - jnp.max(s, axis=-1, keepdims=True)
        p = jnp.exp(s)
        denom = jnp.sum(p, axis=-1, keepdims=True)
        r = pl.reciprocal(denom, approx=True)      # EUP slot (off the VALU critical path)
        r = r * (2.0 - denom * r)                  # one Newton step -> ~f32 accuracy
        p = (p * r).astype(mm_dtype)
        attn_ref[:, lo:hi] = jnp.dot(p, v_h, preferred_element_type=jnp.float32)

    attn = attn_ref[...]                 # (TQ, D) f32

    def layer_norm(y, gamma, beta):
        mu = jnp.mean(y, axis=-1, keepdims=True)
        var = jnp.mean((y - mu) ** 2, axis=-1, keepdims=True)
        return (y - mu) * jax.lax.rsqrt(var + eps) * gamma.astype(jnp.float32) \
               + beta.astype(jnp.float32)

    # residual + LayerNorm (dropout == identity in eval mode)
    y1 = layer_norm(attn + x_q.astype(jnp.float32), mg_ref[...], mb_ref[...])

    # ---- position-wise FFN (elementwise math in f32, matmul operands in mm_dtype) ----
    h1 = jnp.dot(y1.astype(mm_dtype), w1_ref[...],
                 preferred_element_type=jnp.float32) + b1_ref[...].astype(jnp.float32)
    h1 = jnp.maximum(h1, 0.0)
    y2 = jnp.dot(h1.astype(mm_dtype), w2_ref[...],
                 preferred_element_type=jnp.float32) + b2_ref[...].astype(jnp.float32)

    out = layer_norm(y1 + y2, fg_ref[...], fb_ref[...])
    o_ref[...] = out.astype(o_ref.dtype)


def _fuse_heads(w):
    # (H, D, hs) per-head projection weights -> (D, H*hs); column block h == head h
    H, D, hs = w.shape
    return jnp.transpose(w, (1, 0, 2)).reshape(D, H * hs)


def transformer_encoder_block(x, params, num_heads):
    B, S, D = x.shape
    assert D % num_heads == 0
    hs = D // num_heads
    d_ff = params["w1"].shape[1]

    # query-tile size: keep the last-two block dims (8,128)-friendly
    if S % 256 == 0:
        TQ = 256
    elif S % 128 == 0:
        TQ = 128
    else:
        TQ = S
    grid = (B, S // TQ)

    # fuse per-head weights into whole-width, lane-dense matmul operands;
    # cast MXU operands to the activation dtype (bf16 fast path on v6e/v7x)
    mm_dtype = x.dtype
    wq = _fuse_heads(params["wq"]).astype(mm_dtype)
    wk = _fuse_heads(params["wk"]).astype(mm_dtype)
    wv = _fuse_heads(params["wv"]).astype(mm_dtype)
    bv = jnp.transpose(params["bv"], (1, 0, 2)).reshape(1, D)
    w1 = params["w1"].astype(mm_dtype)
    w2 = params["w2"].astype(mm_dtype)

    kernel = functools.partial(encoder_block_kernel,
                               num_heads=num_heads, head_size=hs, eps=1e-5)

    def const(shape):
        # grid-invariant operand (weights / biases / LN params)
        return pl.BlockSpec(shape, lambda b, qi: (0,) * len(shape))

    flops = int(2 * B * S * D * (3 * D + 2 * S + 2 * d_ff))
    param_bytes = sum(int(a.size) * a.dtype.itemsize
                      for a in (wq, wk, wv, bv, w1, w2,
                                params["b1"], params["b2"],
                                params["mha_gamma"], params["mha_beta"],
                                params["ffn_gamma"], params["ffn_beta"]))
    cost = pl.CostEstimate(
        flops=flops,
        transcendentals=int(B * num_heads * S * S),
        bytes_accessed=int(3 * x.size * x.dtype.itemsize + param_bytes))

    # TODO(synk): for large d_ff / S on v7x (64 MiB VMEM), additionally tile d_ff and the
    # KV axis (flash-style online softmax) and single-buffer the grid-invariant weight specs.
    return pl.pallas_call(
        kernel,
        out_shape=jax.ShapeDtypeStruct((B, S, D), x.dtype),
        grid=grid,
        in_specs=[
            pl.BlockSpec((None, TQ, D), lambda b, qi: (b, qi, 0)),   # query-row tile
            pl.BlockSpec((None, S, D), lambda b, qi: (b, 0, 0)),     # full sequence (K/V)
            const((D, D)), const((D, D)), const((D, D)),             # fused Wq, Wk, Wv
            const((1, D)),                                           # fused bv
            const((1, D)), const((1, D)),                            # mha_norm gamma/beta
            const((D, d_ff)), const((1, d_ff)),                      # ffn W1, b1
            const((d_ff, D)), const((1, D)),                         # ffn W2, b2
            const((1, D)), const((1, D)),                            # ffn_norm gamma/beta
        ],
        out_specs=pl.BlockSpec((None, TQ, D), lambda b, qi: (b, qi, 0)),
        scratch_shapes=[pltpu.VMEM((TQ, D), jnp.float32)],
        compiler_params=pltpu.CompilerParams(
            dimension_semantics=("parallel", "parallel"),
            vmem_limit_bytes=64 * 1024 * 1024),
        cost_estimate=cost,
    )(x, x, wq, wk, wv, bv,
      params["mha_gamma"], params["mha_beta"],
      w1, params["b1"], w2, params["b2"],
      params["ffn_gamma"], params["ffn_beta"])


def reference(x, params, num_heads):
    """Pure-JAX reference matching the PyTorch forward (eval mode)."""
    B, S, D = x.shape
    hs = D // num_heads
    heads = []
    for h in range(num_heads):
        q = x @ params["wq"][h]
        k = x @ params["wk"][h]
        v = x @ params["wv"][h] + params["bv"][h]
        s = (q @ jnp.swapaxes(k, -1, -2)) * (hs ** -0.5)
        p = jax.nn.softmax(s, axis=-1)
        heads.append(p @ v)
    attn = jnp.concatenate(heads, axis=-1)

    def ln(y, g, b):
        mu = y.mean(-1, keepdims=True)
        var = ((y - mu) ** 2).mean(-1, keepdims=True)
        return (y - mu) / jnp.sqrt(var + 1e-5) * g + b

    y1 = ln(attn + x, params["mha_gamma"], params["mha_beta"])
    h1 = jax.nn.relu(y1 @ params["w1"] + params["b1"])
    y2 = h1 @ params["w2"] + params["b2"]
    return ln(y1 + y2, params["ffn_gamma"], params["ffn_beta"])


def init_params(key, d_model, num_heads, d_ff):
    hs = d_model // num_heads
    ks = jax.random.split(key, 8)
    sc = 0.05
    return {
        # projection weights stored already transposed: y = x @ W
        "wq": jax.random.normal(ks[0], (num_heads, d_model, hs), jnp.float32) * sc,
        "wk": jax.random.normal(ks[1], (num_heads, d_model, hs), jnp.float32) * sc,
        "wv": jax.random.normal(ks[2], (num_heads, d_model, hs), jnp.float32) * sc,
        "bv": jax.random.normal(ks[3], (num_heads, 1, hs), jnp.float32) * sc,
        "mha_gamma": jnp.ones((1, d_model), jnp.float32),
        "mha_beta": jnp.zeros((1, d_model), jnp.float32),
        "w1": jax.random.normal(ks[4], (d_model, d_ff), jnp.float32) * sc,
        "b1": jax.random.normal(ks[5], (1, d_ff), jnp.float32) * sc,
        "w2": jax.random.normal(ks[6], (d_ff, d_model), jnp.float32) * sc,
        "b2": jax.random.normal(ks[7], (1, d_model), jnp.float32) * sc,
        "ffn_gamma": jnp.ones((1, d_model), jnp.float32),
        "ffn_beta": jnp.zeros((1, d_model), jnp.float32),
    }


if __name__ == "__main__":
    B, S = 2, 8
    d_model, num_heads, d_ff = 32, 4, 64

    key = jax.random.PRNGKey(0)
    kx, kp = jax.random.split(key)
    x = jax.random.normal(kx, (B, S, d_model), jnp.float32)
    params = init_params(kp, d_model, num_heads, d_ff)

    out = transformer_encoder_block(x, params, num_heads)
    out = jax.block_until_ready(out)

    ref = reference(x, params, num_heads)
    assert out.shape == (B, S, d_model)
    assert jnp.allclose(out, ref, atol=2e-4, rtol=2e-4), "mismatch vs pure-JAX reference"

    print("KERNEL_OK")
</pallas_src>

<mosaic_0001>
module attributes {stable_mosaic.version = 11 : i64} {
  func.func @encoder_block_kernel(%arg0: i32, %arg1: i32, %arg2: memref<1x8x32xf32, #tpu.memory_space<vmem>>, %arg3: memref<1x8x32xf32, #tpu.memory_space<vmem>>, %arg4: memref<32x32xf32, #tpu.memory_space<vmem>>, %arg5: memref<32x32xf32, #tpu.memory_space<vmem>>, %arg6: memref<32x32xf32, #tpu.memory_space<vmem>>, %arg7: memref<1x32xf32, #tpu.memory_space<vmem>>, %arg8: memref<1x32xf32, #tpu.memory_space<vmem>>, %arg9: memref<1x32xf32, #tpu.memory_space<vmem>>, %arg10: memref<32x64xf32, #tpu.memory_space<vmem>>, %arg11: memref<1x64xf32, #tpu.memory_space<vmem>>, %arg12: memref<64x32xf32, #tpu.memory_space<vmem>>, %arg13: memref<1x32xf32, #tpu.memory_space<vmem>>, %arg14: memref<1x32xf32, #tpu.memory_space<vmem>>, %arg15: memref<1x32xf32, #tpu.memory_space<vmem>>, %arg16: memref<1x8x32xf32, #tpu.memory_space<vmem>>, %arg17: memref<8x32xf32, #tpu.memory_space<vmem>>) attributes {dimension_semantics = [#tpu.dimension_semantics<parallel>, #tpu.dimension_semantics<parallel>], iteration_bounds = array<i64: 2, 1>, scalar_prefetch = 0 : i64, scratch_operands = 1 : i64, tpu.core_type = #tpu.core_type<tc>, window_params = [{transform_indices = @transform_0, window_bounds = array<i64: 1, 8, 32>}, {transform_indices = @transform_1, window_bounds = array<i64: 1, 8, 32>}, {pipeline_mode = #tpu.pipeline_mode<synchronous>, transform_indices = @transform_2, window_bounds = array<i64: 32, 32>}, {pipeline_mode = #tpu.pipeline_mode<synchronous>, transform_indices = @transform_3, window_bounds = array<i64: 32, 32>}, {pipeline_mode = #tpu.pipeline_mode<synchronous>, transform_indices = @transform_4, window_bounds = array<i64: 32, 32>}, {pipeline_mode = #tpu.pipeline_mode<synchronous>, transform_indices = @transform_5, window_bounds = array<i64: 1, 32>}, {pipeline_mode = #tpu.pipeline_mode<synchronous>, transform_indices = @transform_6, window_bounds = array<i64: 1, 32>}, {pipeline_mode = #tpu.pipeline_mode<synchronous>, transform_indices = @transform_7, window_bounds = array<i64: 1, 32>}, {pipeline_mode = #tpu.pipeline_mode<synchronous>, transform_indices = @transform_8, window_bounds = array<i64: 32, 64>}, {pipeline_mode = #tpu.pipeline_mode<synchronous>, transform_indices = @transform_9, window_bounds = array<i64: 1, 64>}, {pipeline_mode = #tpu.pipeline_mode<synchronous>, transform_indices = @transform_10, window_bounds = array<i64: 64, 32>}, {pipeline_mode = #tpu.pipeline_mode<synchronous>, transform_indices = @transform_11, window_bounds = array<i64: 1, 32>}, {pipeline_mode = #tpu.pipeline_mode<synchronous>, transform_indices = @transform_12, window_bounds = array<i64: 1, 32>}, {pipeline_mode = #tpu.pipeline_mode<synchronous>, transform_indices = @transform_13, window_bounds = array<i64: 1, 32>}, {transform_indices = @transform_14, window_bounds = array<i64: 1, 8, 32>}]} {
    %c0 = arith.constant 0 : index
    %c0_0 = arith.constant 0 : index
    %c0_1 = arith.constant 0 : index
    %0 = vector.load %arg2[%c0, %c0_0, %c0_1] : memref<1x8x32xf32, #tpu.memory_space<vmem>>, vector<1x8x32xf32>
    %1 = vector.shape_cast %0 : vector<1x8x32xf32> to vector<8x32xf32>
    %c0_2 = arith.constant 0 : index
    %c0_3 = arith.constant 0 : index
    %c0_4 = arith.constant 0 : index
    %2 = vector.load %arg3[%c0_2, %c0_3, %c0_4] : memref<1x8x32xf32, #tpu.memory_space<vmem>>, vector<1x8x32xf32>
    %3 = vector.shape_cast %2 : vector<1x8x32xf32> to vector<8x32xf32>
    %c0_5 = arith.constant 0 : index
    %c0_6 = arith.constant 0 : index
    %4 = vector.load %arg4[%c0_5, %c0_6] : memref<32x32xf32, #tpu.memory_space<vmem>>, vector<32x32xf32>
    %cst = arith.constant dense<0.000000e+00> : vector<8x32xf32>
    %5 = tpu.matmul %1, %4, %cst {dimension_numbers = #tpu.dot_dimension_numbers<[1], [0], [0], [1], [0, 0, 1, 1], [], []>} : vector<8x32xf32>, vector<32x32xf32>, vector<8x32xf32> -> vector<8x32xf32>
    %cst_7 = arith.constant 0.353553385 : f32
    %6 = vector.broadcast %cst_7 : f32 to vector<8x32xf32>
    %7 = arith.mulf %5, %6 : vector<8x32xf32>
    %c0_8 = arith.constant 0 : index
    %c0_9 = arith.constant 0 : index
    %8 = vector.load %arg5[%c0_8, %c0_9] : memref<32x32xf32, #tpu.memory_space<vmem>>, vector<32x32xf32>
    %cst_10 = arith.constant dense<0.000000e+00> : vector<8x32xf32>
    %9 = tpu.matmul %3, %8, %cst_10 {dimension_numbers = #tpu.dot_dimension_numbers<[1], [0], [0], [1], [0, 0, 1, 1], [], []>} : vector<8x32xf32>, vector<32x32xf32>, vector<8x32xf32> -> vector<8x32xf32>
    %c0_11 = arith.constant 0 : index
    %c0_12 = arith.constant 0 : index
    %10 = vector.load %arg6[%c0_11, %c0_12] : memref<32x32xf32, #tpu.memory_space<vmem>>, vector<32x32xf32>
    %cst_13 = arith.constant dense<0.000000e+00> : vector<8x32xf32>
    %11 = tpu.matmul %3, %10, %cst_13 {dimension_numbers = #tpu.dot_dimension_numbers<[1], [0], [0], [1], [0, 0, 1, 1], [], []>} : vector<8x32xf32>, vector<32x32xf32>, vector<8x32xf32> -> vector<8x32xf32>
    %c0_14 = arith.constant 0 : index
    %c0_15 = arith.constant 0 : index
    %12 = vector.load %arg7[%c0_14, %c0_15] : memref<1x32xf32, #tpu.memory_space<vmem>>, vector<1x32xf32>
    %13 = vector.broadcast %12 : vector<1x32xf32> to vector<8x32xf32>
    %14 = arith.addf %11, %13 : vector<8x32xf32>
    %15 = vector.extract_strided_slice %7 {offsets = [0, 0], sizes = [8, 8], strides = [1, 1]} : vector<8x32xf32> to vector<8x8xf32>
    %16 = vector.extract_strided_slice %9 {offsets = [0, 0], sizes = [8, 8], strides = [1, 1]} : vector<8x32xf32> to vector<8x8xf32>
    %17 = vector.extract_strided_slice %14 {offsets = [0, 0], sizes = [8, 8], strides = [1, 1]} : vector<8x32xf32> to vector<8x8xf32>
    %cst_16 = arith.constant dense<0.000000e+00> : vector<8x8xf32>
    %18 = tpu.matmul %15, %16, %cst_16 {dimension_numbers = #tpu.dot_dimension_numbers<[1], [1], [0], [0], [0, 0, 1, 0], [], []>} : vector<8x8xf32>, vector<8x8xf32>, vector<8x8xf32> -> vector<8x8xf32>
    %cst_17 = arith.constant dense<0xFF800000> : vector<8xf32>
    %19 = vector.multi_reduction <maximumf>, %18, %cst_17 [1] : vector<8x8xf32> to vector<8xf32>
    %20 = vector.shape_cast %19 : vector<8xf32> to vector<8x1xf32>
    %21 = vector.broadcast %20 : vector<8x1xf32> to vector<8x8xf32>
    %22 = arith.subf %18, %21 : vector<8x8xf32>
    %23 = math.exp %22 : vector<8x8xf32>
    %cst_18 = arith.constant dense<0.000000e+00> : vector<8xf32>
    %24 = vector.multi_reduction <add>, %23, %cst_18 [1] : vector<8x8xf32> to vector<8xf32>
    %25 = vector.shape_cast %24 : vector<8xf32> to vector<8x1xf32>
    %26 = tpu.reciprocal %25 {approx = true} : vector<8x1xf32> -> vector<8x1xf32>
    %27 = arith.mulf %25, %26 : vector<8x1xf32>
    %cst_19 = arith.constant 2.000000e+00 : f32
    %28 = vector.broadcast %cst_19 : f32 to vector<8x1xf32>
    %29 = arith.subf %28, %27 : vector<8x1xf32>
    %30 = arith.mulf %26, %29 : vector<8x1xf32>
    %31 = vector.broadcast %30 : vector<8x1xf32> to vector<8x8xf32>
    %32 = arith.mulf %23, %31 : vector<8x8xf32>
    %cst_20 = arith.constant dense<0.000000e+00> : vector<8x8xf32>
    %33 = tpu.matmul %32, %17, %cst_20 {dimension_numbers = #tpu.dot_dimension_numbers<[1], [0], [0], [1], [0, 0, 1, 1], [], []>} : vector<8x8xf32>, vector<8x8xf32>, vector<8x8xf32> -> vector<8x8xf32>
    %c0_21 = arith.constant 0 : index
    %c0_22 = arith.constant 0 : index
    %34 = vector.load %arg17[%c0_21, %c0_22] : memref<8x32xf32, #tpu.memory_space<vmem>>, vector<8x8xf32>
    tpu.vector_store %arg17[%c0_21, %c0_22], %33 {strides = array<i32>} : memref<8x32xf32, #tpu.memory_space<vmem>>, vector<8x8xf32>,
    %35 = vector.extract_strided_slice %7 {offsets = [0, 8], sizes = [8, 8], strides = [1, 1]} : vector<8x32xf32> to vector<8x8xf32>
    %36 = vector.extract_strided_slice %9 {offsets = [0, 8], sizes = [8, 8], strides = [1, 1]} : vector<8x32xf32> to vector<8x8xf32>
    %37 = vector.extract_strided_slice %14 {offsets = [0, 8], sizes = [8, 8], strides = [1, 1]} : vector<8x32xf32> to vector<8x8xf32>
    %cst_23 = arith.constant dense<0.000000e+00> : vector<8x8xf32>
    %38 = tpu.matmul %35, %36, %cst_23 {dimension_numbers = #tpu.dot_dimension_numbers<[1], [1], [0], [0], [0, 0, 1, 0], [], []>} : vector<8x8xf32>, vector<8x8xf32>, vector<8x8xf32> -> vector<8x8xf32>
    %cst_24 = arith.constant dense<0xFF800000> : vector<8xf32>
    %39 = vector.multi_reduction <maximumf>, %38, %cst_24 [1] : vector<8x8xf32> to vector<8xf32>
    %40 = vector.shape_cast %39 : vector<8xf32> to vector<8x1xf32>
    %41 = vector.broadcast %40 : vector<8x1xf32> to vector<8x8xf32>
    %42 = arith.subf %38, %41 : vector<8x8xf32>
    %43 = math.exp %42 : vector<8x8xf32>
    %cst_25 = arith.constant dense<0.000000e+00> : vector<8xf32>
    %44 = vector.multi_reduction <add>, %43, %cst_25 [1] : vector<8x8xf32> to vector<8xf32>
    %45 = vector.shape_cast %44 : vector<8xf32> to vector<8x1xf32>
    %46 = tpu.reciprocal %45 {approx = true} : vector<8x1xf32> -> vector<8x1xf32>
    %47 = arith.mulf %45, %46 : vector<8x1xf32>
    %cst_26 = arith.constant 2.000000e+00 : f32
    %48 = vector.broadcast %cst_26 : f32 to vector<8x1xf32>
    %49 = arith.subf %48, %47 : vector<8x1xf32>
    %50 = arith.mulf %46, %49 : vector<8x1xf32>
    %51 = vector.broadcast %50 : vector<8x1xf32> to vector<8x8xf32>
    %52 = arith.mulf %43, %51 : vector<8x8xf32>
    %cst_27 = arith.constant dense<0.000000e+00> : vector<8x8xf32>
    %53 = tpu.matmul %52, %37, %cst_27 {dimension_numbers = #tpu.dot_dimension_numbers<[1], [0], [0], [1], [0, 0, 1, 1], [], []>} : vector<8x8xf32>, vector<8x8xf32>, vector<8x8xf32> -> vector<8x8xf32>
    %c0_28 = arith.constant 0 : index
    %c8 = arith.constant 8 : index
    %54 = vector.load %arg17[%c0_28, %c8] : memref<8x32xf32, #tpu.memory_space<vmem>>, vector<8x8xf32>
    tpu.vector_store %arg17[%c0_28, %c8], %53 {strides = array<i32>} : memref<8x32xf32, #tpu.memory_space<vmem>>, vector<8x8xf32>,
    %55 = vector.extract_strided_slice %7 {offsets = [0, 16], sizes = [8, 8], strides = [1, 1]} : vector<8x32xf32> to vector<8x8xf32>
    %56 = vector.extract_strided_slice %9 {offsets = [0, 16], sizes = [8, 8], strides = [1, 1]} : vector<8x32xf32> to vector<8x8xf32>
    %57 = vector.extract_strided_slice %14 {offsets = [0, 16], sizes = [8, 8], strides = [1, 1]} : vector<8x32xf32> to vector<8x8xf32>
    %cst_29 = arith.constant dense<0.000000e+00> : vector<8x8xf32>
    %58 = tpu.matmul %55, %56, %cst_29 {dimension_numbers = #tpu.dot_dimension_numbers<[1], [1], [0], [0], [0, 0, 1, 0], [], []>} : vector<8x8xf32>, vector<8x8xf32>, vector<8x8xf32> -> vector<8x8xf32>
    %cst_30 = arith.constant dense<0xFF800000> : vector<8xf32>
    %59 = vector.multi_reduction <maximumf>, %58, %cst_30 [1] : vector<8x8xf32> to vector<8xf32>
    %60 = vector.shape_cast %59 : vector<8xf32> to vector<8x1xf32>
    %61 = vector.broadcast %60 : vector<8x1xf32> to vector<8x8xf32>
    %62 = arith.subf %58, %61 : vector<8x8xf32>
    %63 = math.exp %62 : vector<8x8xf32>
    %cst_31 = arith.constant dense<0.000000e+00> : vector<8xf32>
    %64 = vector.multi_reduction <add>, %63, %cst_31 [1] : vector<8x8xf32> to vector<8xf32>
    %65 = vector.shape_cast %64 : vector<8xf32> to vector<8x1xf32>
    %66 = tpu.reciprocal %65 {approx = true} : vector<8x1xf32> -> vector<8x1xf32>
    %67 = arith.mulf %65, %66 : vector<8x1xf32>
    %cst_32 = arith.constant 2.000000e+00 : f32
    %68 = vector.broadcast %cst_32 : f32 to vector<8x1xf32>
    %69 = arith.subf %68, %67 : vector<8x1xf32>
    %70 = arith.mulf %66, %69 : vector<8x1xf32>
    %71 = vector.broadcast %70 : vector<8x1xf32> to vector<8x8xf32>
    %72 = arith.mulf %63, %71 : vector<8x8xf32>
    %cst_33 = arith.constant dense<0.000000e+00> : vector<8x8xf32>
    %73 = tpu.matmul %72, %57, %cst_33 {dimension_numbers = #tpu.dot_dimension_numbers<[1], [0], [0], [1], [0, 0, 1, 1], [], []>} : vector<8x8xf32>, vector<8x8xf32>, vector<8x8xf32> -> vector<8x8xf32>
    %c0_34 = arith.constant 0 : index
    %c16 = arith.constant 16 : index
    %74 = vector.load %arg17[%c0_34, %c16] : memref<8x32xf32, #tpu.memory_space<vmem>>, vector<8x8xf32>
    tpu.vector_store %arg17[%c0_34, %c16], %73 {strides = array<i32>} : memref<8x32xf32, #tpu.memory_space<vmem>>, vector<8x8xf32>,
    %75 = vector.extract_strided_slice %7 {offsets = [0, 24], sizes = [8, 8], strides = [1, 1]} : vector<8x32xf32> to vector<8x8xf32>
    %76 = vector.extract_strided_slice %9 {offsets = [0, 24], sizes = [8, 8], strides = [1, 1]} : vector<8x32xf32> to vector<8x8xf32>
    %77 = vector.extract_strided_slice %14 {offsets = [0, 24], sizes = [8, 8], strides = [1, 1]} : vector<8x32xf32> to vector<8x8xf32>
    %cst_35 = arith.constant dense<0.000000e+00> : vector<8x8xf32>
    %78 = tpu.matmul %75, %76, %cst_35 {dimension_numbers = #tpu.dot_dimension_numbers<[1], [1], [0], [0], [0, 0, 1, 0], [], []>} : vector<8x8xf32>, vector<8x8xf32>, vector<8x8xf32> -> vector<8x8xf32>
    %cst_36 = arith.constant dense<0xFF800000> : vector<8xf32>
    %79 = vector.multi_reduction <maximumf>, %78, %cst_36 [1] : vector<8x8xf32> to vector<8xf32>
    %80 = vector.shape_cast %79 : vector<8xf32> to vector<8x1xf32>
    %81 = vector.broadcast %80 : vector<8x1xf32> to vector<8x8xf32>
    %82 = arith.subf %78, %81 : vector<8x8xf32>
    %83 = math.exp %82 : vector<8x8xf32>
    %cst_37 = arith.constant dense<0.000000e+00> : vector<8xf32>
    %84 = vector.multi_reduction <add>, %83, %cst_37 [1] : vector<8x8xf32> to vector<8xf32>
    %85 = vector.shape_cast %84 : vector<8xf32> to vector<8x1xf32>
    %86 = tpu.reciprocal %85 {approx = true} : vector<8x1xf32> -> vector<8x1xf32>
    %87 = arith.mulf %85, %86 : vector<8x1xf32>
    %cst_38 = arith.constant 2.000000e+00 : f32
    %88 = vector.broadcast %cst_38 : f32 to vector<8x1xf32>
    %89 = arith.subf %88, %87 : vector<8x1xf32>
    %90 = arith.mulf %86, %89 : vector<8x1xf32>
    %91 = vector.broadcast %90 : vector<8x1xf32> to vector<8x8xf32>
    %92 = arith.mulf %83, %91 : vector<8x8xf32>
    %cst_39 = arith.constant dense<0.000000e+00> : vector<8x8xf32>
    %93 = tpu.matmul %92, %77, %cst_39 {dimension_numbers = #tpu.dot_dimension_numbers<[1], [0], [0], [1], [0, 0, 1, 1], [], []>} : vector<8x8xf32>, vector<8x8xf32>, vector<8x8xf32> -> vector<8x8xf32>
    %c0_40 = arith.constant 0 : index
    %c24 = arith.constant 24 : index
    %94 = vector.load %arg17[%c0_40, %c24] : memref<8x32xf32, #tpu.memory_space<vmem>>, vector<8x8xf32>
    tpu.vector_store %arg17[%c0_40, %c24], %93 {strides = array<i32>} : memref<8x32xf32, #tpu.memory_space<vmem>>, vector<8x8xf32>,
    %c0_41 = arith.constant 0 : index
    %c0_42 = arith.constant 0 : index
    %95 = vector.load %arg17[%c0_41, %c0_42] : memref<8x32xf32, #tpu.memory_space<vmem>>, vector<8x32xf32>
    %96 = arith.addf %95, %1 : vector<8x32xf32>
    %c0_43 = arith.constant 0 : index
    %c0_44 = arith.constant 0 : index
    %97 = vector.load %arg8[%c0_43, %c0_44] : memref<1x32xf32, #tpu.memory_space<vmem>>, vector<1x32xf32>
    %c0_45 = arith.constant 0 : index
    %c0_46 = arith.constant 0 : index
    %98 = vector.load %arg9[%c0_45, %c0_46] : memref<1x32xf32, #tpu.memory_space<vmem>>, vector<1x32xf32>
    %cst_47 = arith.constant dense<0.000000e+00> : vector<8xf32>
    %99 = vector.multi_reduction <add>, %96, %cst_47 [1] : vector<8x32xf32> to vector<8xf32>
    %100 = vector.shape_cast %99 : vector<8xf32> to vector<8x1xf32>
    %cst_48 = arith.constant 3.200000e+01 : f32
    %101 = vector.broadcast %cst_48 : f32 to vector<8x1xf32>
    %102 = arith.divf %100, %101 : vector<8x1xf32>
    %103 = vector.broadcast %102 : vector<8x1xf32> to vector<8x32xf32>
    %104 = arith.subf %96, %103 : vector<8x32xf32>
    %105 = arith.mulf %104, %104 : vector<8x32xf32>
    %cst_49 = arith.constant dense<0.000000e+00> : vector<8xf32>
    %106 = vector.multi_reduction <add>, %105, %cst_49 [1] : vector<8x32xf32> to vector<8xf32>
    %107 = vector.shape_cast %106 : vector<8xf32> to vector<8x1xf32>
    %cst_50 = arith.constant 3.200000e+01 : f32
    %108 = vector.broadcast %cst_50 : f32 to vector<8x1xf32>
    %109 = arith.divf %107, %108 : vector<8x1xf32>
    %110 = vector.broadcast %102 : vector<8x1xf32> to vector<8x32xf32>
    %111 = arith.subf %96, %110 : vector<8x32xf32>
    %cst_51 = arith.constant 9.99999974E-6 : f32
    %112 = vector.broadcast %cst_51 : f32 to vector<8x1xf32>
    %113 = arith.addf %109, %112 : vector<8x1xf32>
    %114 = math.rsqrt %113 : vector<8x1xf32>
    %115 = vector.broadcast %114 : vector<8x1xf32> to vector<8x32xf32>
    %116 = arith.mulf %111, %115 : vector<8x32xf32>
    %117 = vector.broadcast %97 : vector<1x32xf32> to vector<8x32xf32>
    %118 = arith.mulf %116, %117 : vector<8x32xf32>
    %119 = vector.broadcast %98 : vector<1x32xf32> to vector<8x32xf32>
    %120 = arith.addf %118, %119 : vector<8x32xf32>
    %c0_52 = arith.constant 0 : index
    %c0_53 = arith.constant 0 : index
    %121 = vector.load %arg10[%c0_52, %c0_53] : memref<32x64xf32, #tpu.memory_space<vmem>>, vector<32x64xf32>
    %cst_54 = arith.constant dense<0.000000e+00> : vector<8x64xf32>
    %122 = tpu.matmul %120, %121, %cst_54 {dimension_numbers = #tpu.dot_dimension_numbers<[1], [0], [0], [1], [0, 0, 1, 1], [], []>} : vector<8x32xf32>, vector<32x64xf32>, vector<8x64xf32> -> vector<8x64xf32>
    %c0_55 = arith.constant 0 : index
    %c0_56 = arith.constant 0 : index
    %123 = vector.load %arg11[%c0_55, %c0_56] : memref<1x64xf32, #tpu.memory_space<vmem>>, vector<1x64xf32>
    %124 = vector.broadcast %123 : vector<1x64xf32> to vector<8x64xf32>
    %125 = arith.addf %122, %124 : vector<8x64xf32>
    %cst_57 = arith.constant 0.000000e+00 : f32
    %126 = vector.broadcast %cst_57 : f32 to vector<8x64xf32>
    %127 = arith.maximumf %125, %126 : vector<8x64xf32>
    %c0_58 = arith.constant 0 : index
    %c0_59 = arith.constant 0 : index
    %128 = vector.load %arg12[%c0_58, %c0_59] : memref<64x32xf32, #tpu.memory_space<vmem>>, vector<64x32xf32>
    %cst_60 = arith.constant dense<0.000000e+00> : vector<8x32xf32>
    %129 = tpu.matmul %127, %128, %cst_60 {dimension_numbers = #tpu.dot_dimension_numbers<[1], [0], [0], [1], [0, 0, 1, 1], [], []>} : vector<8x64xf32>, vector<64x32xf32>, vector<8x32xf32> -> vector<8x32xf32>
    %c0_61 = arith.constant 0 : index
    %c0_62 = arith.constant 0 : index
    %130 = vector.load %arg13[%c0_61, %c0_62] : memref<1x32xf32, #tpu.memory_space<vmem>>, vector<1x32xf32>
    %131 = vector.broadcast %130 : vector<1x32xf32> to vector<8x32xf32>
    %132 = arith.addf %129, %131 : vector<8x32xf32>
    %133 = arith.addf %120, %132 : vector<8x32xf32>
    %c0_63 = arith.constant 0 : index
    %c0_64 = arith.constant 0 : index
    %134 = vector.load %arg14[%c0_63, %c0_64] : memref<1x32xf32, #tpu.memory_space<vmem>>, vector<1x32xf32>
    %c0_65 = arith.constant 0 : index
    %c0_66 = arith.constant 0 : index
    %135 = vector.load %arg15[%c0_65, %c0_66] : memref<1x32xf32, #tpu.memory_space<vmem>>, vector<1x32xf32>
    %cst_67 = arith.constant dense<0.000000e+00> : vector<8xf32>
    %136 = vector.multi_reduction <add>, %133, %cst_67 [1] : vector<8x32xf32> to vector<8xf32>
    %137 = vector.shape_cast %136 : vector<8xf32> to vector<8x1xf32>
    %cst_68 = arith.constant 3.200000e+01 : f32
    %138 = vector.broadcast %cst_68 : f32 to vector<8x1xf32>
    %139 = arith.divf %137, %138 : vector<8x1xf32>
    %140 = vector.broadcast %139 : vector<8x1xf32> to vector<8x32xf32>
    %141 = arith.subf %133, %140 : vector<8x32xf32>
    %142 = arith.mulf %141, %141 : vector<8x32xf32>
    %cst_69 = arith.constant dense<0.000000e+00> : vector<8xf32>
    %143 = vector.multi_reduction <add>, %142, %cst_69 [1] : vector<8x32xf32> to vector<8xf32>
    %144 = vector.shape_cast %143 : vector<8xf32> to vector<8x1xf32>
    %cst_70 = arith.constant 3.200000e+01 : f32
    %145 = vector.broadcast %cst_70 : f32 to vector<8x1xf32>
    %146 = arith.divf %144, %145 : vector<8x1xf32>
    %147 = vector.broadcast %139 : vector<8x1xf32> to vector<8x32xf32>
    %148 = arith.subf %133, %147 : vector<8x32xf32>
    %cst_71 = arith.constant 9.99999974E-6 : f32
    %149 = vector.broadcast %cst_71 : f32 to vector<8x1xf32>
    %150 = arith.addf %146, %149 : vector<8x1xf32>
    %151 = math.rsqrt %150 : vector<8x1xf32>
    %152 = vector.broadcast %151 : vector<8x1xf32> to vector<8x32xf32>
    %153 = arith.mulf %148, %152 : vector<8x32xf32>
    %154 = vector.broadcast %134 : vector<1x32xf32> to vector<8x32xf32>
    %155 = arith.mulf %153, %154 : vector<8x32xf32>
    %156 = vector.broadcast %135 : vector<1x32xf32> to vector<8x32xf32>
    %157 = arith.addf %155, %156 : vector<8x32xf32>
    %c0_72 = arith.constant 0 : index
    %c0_73 = arith.constant 0 : index
    %c0_74 = arith.constant 0 : index
    %158 = vector.load %arg16[%c0_72, %c0_73, %c0_74] : memref<1x8x32xf32, #tpu.memory_space<vmem>>, vector<1x8x32xf32>
    %159 = vector.shape_cast %158 : vector<1x8x32xf32> to vector<8x32xf32>
    %160 = vector.shape_cast %157 : vector<8x32xf32> to vector<1x8x32xf32>
    tpu.vector_store %arg16[%c0_72, %c0_73, %c0_74], %160 {strides = array<i32>} : memref<1x8x32xf32, #tpu.memory_space<vmem>>, vector<1x8x32xf32>,
    return
  }
  func.func @transform_0(%arg0: i32, %arg1: i32) -> (i32, i32, i32) {
    %c0_i32 = arith.constant 0 : i32
    %c0_i32_0 = arith.constant 0 : i32
    return %arg0, %arg1, %c0_i32 : i32, i32, i32
  }
  func.func @transform_1(%arg0: i32, %arg1: i32) -> (i32, i32, i32) {
    %c0_i32 = arith.constant 0 : i32
    %c0_i32_0 = arith.constant 0 : i32
    %c0_i32_1 = arith.constant 0 : i32
    return %arg0, %c0_i32, %c0_i32_0 : i32, i32, i32
  }
  func.func @transform_2(%arg0: i32, %arg1: i32) -> (i32, i32) {
    %c0_i32 = arith.constant 0 : i32
    %c0_i32_0 = arith.constant 0 : i32
    %c0_i32_1 = arith.constant 0 : i32
    return %c0_i32, %c0_i32_0 : i32, i32
  }
  func.func @transform_3(%arg0: i32, %arg1: i32) -> (i32, i32) {
    %c0_i32 = arith.constant 0 : i32
    %c0_i32_0 = arith.constant 0 : i32
    %c0_i32_1 = arith.constant 0 : i32
    return %c0_i32, %c0_i32_0 : i32, i32
  }
  func.func @transform_4(%arg0: i32, %arg1: i32) -> (i32, i32) {
    %c0_i32 = arith.constant 0 : i32
    %c0_i32_0 = arith.constant 0 : i32
    %c0_i32_1 = arith.constant 0 : i32
    return %c0_i32, %c0_i32_0 : i32, i32
  }
  func.func @transform_5(%arg0: i32, %arg1: i32) -> (i32, i32) {
    %c0_i32 = arith.constant 0 : i32
    %c0_i32_0 = arith.constant 0 : i32
    %c0_i32_1 = arith.constant 0 : i32
    return %c0_i32, %c0_i32_0 : i32, i32
  }
  func.func @transform_6(%arg0: i32, %arg1: i32) -> (i32, i32) {
    %c0_i32 = arith.constant 0 : i32
    %c0_i32_0 = arith.constant 0 : i32
    %c0_i32_1 = arith.constant 0 : i32
    return %c0_i32, %c0_i32_0 : i32, i32
  }
  func.func @transform_7(%arg0: i32, %arg1: i32) -> (i32, i32) {
    %c0_i32 = arith.constant 0 : i32
    %c0_i32_0 = arith.constant 0 : i32
    %c0_i32_1 = arith.constant 0 : i32
    return %c0_i32, %c0_i32_0 : i32, i32
  }
  func.func @transform_8(%arg0: i32, %arg1: i32) -> (i32, i32) {
    %c0_i32 = arith.constant 0 : i32
    %c0_i32_0 = arith.constant 0 : i32
    %c0_i32_1 = arith.constant 0 : i32
    return %c0_i32, %c0_i32_0 : i32, i32
  }
  func.func @transform_9(%arg0: i32, %arg1: i32) -> (i32, i32) {
    %c0_i32 = arith.constant 0 : i32
    %c0_i32_0 = arith.constant 0 : i32
    %c0_i32_1 = arith.constant 0 : i32
    return %c0_i32, %c0_i32_0 : i32, i32
  }
  func.func @transform_10(%arg0: i32, %arg1: i32) -> (i32, i32) {
    %c0_i32 = arith.constant 0 : i32
    %c0_i32_0 = arith.constant 0 : i32
    %c0_i32_1 = arith.constant 0 : i32
    return %c0_i32, %c0_i32_0 : i32, i32
  }
  func.func @transform_11(%arg0: i32, %arg1: i32) -> (i32, i32) {
    %c0_i32 = arith.constant 0 : i32
    %c0_i32_0 = arith.constant 0 : i32
    %c0_i32_1 = arith.constant 0 : i32
    return %c0_i32, %c0_i32_0 : i32, i32
  }
  func.func @transform_12(%arg0: i32, %arg1: i32) -> (i32, i32) {
    %c0_i32 = arith.constant 0 : i32
    %c0_i32_0 = arith.constant 0 : i32
    %c0_i32_1 = arith.constant 0 : i32
    return %c0_i32, %c0_i32_0 : i32, i32
  }
  func.func @transform_13(%arg0: i32, %arg1: i32) -> (i32, i32) {
    %c0_i32 = arith.constant 0 : i32
    %c0_i32_0 = arith.constant 0 : i32
    %c0_i32_1 = arith.constant 0 : i32
    return %c0_i32, %c0_i32_0 : i32, i32
  }
  func.func @transform_14(%arg0: i32, %arg1: i32) -> (i32, i32, i32) {
    %c0_i32 = arith.constant 0 : i32
    %c0_i32_0 = arith.constant 0 : i32
    return %arg0, %arg1, %c0_i32 : i32, i32, i32
  }
}

</mosaic_0001>

<bundles_post_ra>
// kernel: tpu_custom_call.1
= control target key start
LH: loop header
LB: loop body
LE: loop exit
PB: predicated region body
PF: predicated region fallthrough
CT: control target
= control target key end

     0   :  { %s2781_s0 = inlined_call_operand.hbm [shape: f32[2,8,32], index: 0, kind: input, shape index: {}]   ;;  %s2782_s1 = inlined_call_operand.hbm [shape: f32[2,8,32], index: 1, kind: input, shape index: {}]   ;;  %s2783_s2 = inlined_call_operand.vmem [shape: f32[32,32], index: 2, kind: input, shape index: {}]   ;;  %s2784_s3 = inlined_call_operand.vmem [shape: f32[32,32], index: 3, kind: input, shape index: {}]   ;;  %s2785_s4 = inlined_call_operand.vmem [shape: f32[32,32], index: 4, kind: input, shape index: {}]   ;;  %s2786_s5 = inlined_call_operand.vmem [shape: f32[1,32], index: 5, kind: input, shape index: {}]   ;;  %s2787_s6 = inlined_call_operand.vmem [shape: f32[1,32], index: 6, kind: input, shape index: {}]   ;;  %s2788_s7 = inlined_call_operand.vmem [shape: f32[1,32], index: 7, kind: input, shape index: {}]   ;;  %s2789_s8 = inlined_call_operand.hbm [shape: f32[32,64], index: 8, kind: input, shape index: {}]   ;;  %s2790_s9 = inlined_call_operand.vmem [shape: f32[1,64], index: 9, kind: input, shape index: {}]   ;;  %s2791_s10 = inlined_call_operand.vmem [shape: f32[64,32], index: 10, kind: input, shape index: {}]   ;;  %s2792_s11 = inlined_call_operand.vmem [shape: f32[1,32], index: 11, kind: input, shape index: {}]   ;;  %s2793_s12 = inlined_call_operand.vmem [shape: f32[1,32], index: 12, kind: input, shape index: {}]   ;;  %s2794_s13 = inlined_call_operand.vmem [shape: f32[1,32], index: 13, kind: input, shape index: {}]   ;;  %s2795_s14 = inlined_call_operand.hbm [shape: f32[2,8,32], index: 14, kind: output, shape index: {}]  }
   0x1   :  { %2803 = sst [smem:[#allocation20_spill]] %s2789_s8 }
   0x2   :  { %2804 = sst [smem:[#allocation21_spill]] %s2790_s9 }
   0x3   :  { %2805 = sst [smem:[#allocation22_spill]] %s2792_s11 }
   0x4   :  { %2806 = sst [smem:[#allocation23_spill]] %s2793_s12 }
   0x5   :  { %2807 = sst [smem:[#allocation24_spill]] %s2794_s13 }
   0x6   :  { %2808 = sst [smem:[#allocation25_spill]] %s2795_s14 }
   0x7   :  { %19 = vsyncpa [#allocation4], 0 }
   0x8   :  { %21 = vsyncpa [#allocation4 + $0x1], 0 }
   0x9   :  { %22 = vsyncpa [#allocation7], 0 }
   0xa   :  { %24 = vsyncpa [#allocation7 + $0x1], 0 }
   0xb   :  { %25 = vsyncpa [#allocation5], 0 }
   0xc   :  { %27 = vsyncpa [#allocation5 + $0x1], 0  ;;  %s2401_s29 = smov 0   ;;  %s2403_s30 = smov 0  }
   0xd   :  { %s2405_s15 = smov 0   ;;  %s2407_s16 = smov 0  }
   0xe   :  { %s2409_s17 = smov 0   ;;  %s2411_s18 = smov 0  }
   0xf LB: > { %2809 = sst [smem:[#allocation14_spill]] %s2290_s29  ;;  %s2432_s19 = sadd.s32 4294967295, %s2310_s18   ;;  %s2310_s18 = sphi %s2411_s18, %s33_s18   ;;  %s2306_s17 = sphi %s2409_s17, %s2836_s17   ;;  %s2302_s16 = sphi %s2407_s16, %s2835_s16   ;;  %s2298_s15 = sphi %s2405_s15, %s2839_s15   ;;  %s2294_s30 = sphi %s2403_s30, %s2838_s30   ;;  %s2290_s29 = sphi %s2401_s29, %s2837_s29  }
  0x10   : > { %2810 = sst [smem:[#allocation15_spill]] %s2302_s16  ;;  %s1843_s20 = sadd.s32 4294967294, %s2310_s18  }
  0x11   : > { %2811 = sst [smem:[#allocation16_spill]] %s2306_s17  ;;  %p67_p0 = scmp.ne.s32.totalorder %s2294_s30, %s2290_s29 }
  0x12   : > { %p68_p1 = scmp.eq.s32.totalorder %s2432_s19, 0  ;;  %p377_p3 = scmp.eq.s32.totalorder %s1843_s20, 1 }
  0x13   : > { %p1844_p5 = scmp.ge.s32.totalorder %s2310_s18, 1  ;;  %p384_p7 = scmp.lt.s32.totalorder %s2310_s18, 3 }
  0x14   : > { %p2441_p4 = por %p68_p1, %p67_p0  ;;  %p2446_p6 = por %p377_p3, %p67_p0 }
  0x15   : > { %p2451_p8 = pnand %p1844_p5, %p384_p7  ;;  %s2312_s24 = smov [#allocation8]  }
  0x16   : > { %s2813_s22 = scalar_select %p2446_p6, 1, 0 }
  0x17   : > { %s414_s25 = sshll.u32 %s2312_s24, 4  ;;  %p2042_p9 = pneg %p2451_p8  ;;  %s415_s25 = int_to_ptr.vmem [resolvable:$true] %s414_s25 }
  0x18   : > { %2814 = sst [smem:[#allocation17_spill]] %s2813_s22  ;;  %s45_s27 = sadd.s32 1, %s2306_s17 }
  0x19   : > { %p2460_p11 = pnand %p2042_p9, %p68_p1  ;;  %s2151_s28 = scalar_lea.vmem %s415_s25, 512 }
  0x1a   : > { %p2152_p13 = scmp.ne.s32.totalorder %s415_s25, %s2151_s28  ;;  %p2159_p5 = scmp.lt.s32.totalorder %s415_s25, %s415_s25 }
  0x1b   : > { %p2142_p12 = pneg %p2460_p11  ;;  %p2160_p7 = scmp.lt.s32.totalorder %s2151_s28, %s2151_s28 }
  0x1d   : > { %p2154_p0 = pnand %p2152_p13, %p2142_p12  ;;  %p2161_p2 = por %p2160_p7, %p2159_p5 }
  0x1f   : > { %p2155_p3 = pneg %p2154_p0 }
  0x21   : > { %p2162_p6 = pnand %p2161_p2, %p2155_p3 }
  0x23   : > { %2165 = shalt.err (!%p2162_p6)
}
  0x24   : > { %s2313_s20 = smov 128   ;;  %s2314_s24 = smov 8  }
  0x25   : > { %s2817_s8 = sld [smem:[#allocation20_spill]]  ;;  %p47_p2 = scmp.ge.s32.totalorder %s45_s27, 2 }
  0x26   : > { %s54_s28 = sadd.s32 1, %s2298_s15  ;;  %p61_p6 = scmp.ne.s32.totalorder %s2298_s15, %s2294_s30 }
  0x27   : > { %p62_p9 = scmp.eq.s32.totalorder %s2310_s18, 0  ;;  %s2841_s27 = smov (%p47_p2, %s45_s27), 0 }
  0x28   : > { %2818 = sst [smem:[#allocation18_spill]] %s2841_s27  ;;  %p2820_p13 = scmp.eq.s32.totalorder %s2432_s19, 1 }
  0x29   : > { %p2478_p12 = por %p62_p9, %p61_p6  ;;  %s49_s29 = ssub.s32 %s2306_s17, %s2841_s27 }
  0x2a   : > { %p2484_p0 = por %p2820_p13, %p61_p6  ;;  %p52_p3 = scmp.eq.s32.totalorder %s49_s29, 0 }
  0x2b   : > { %2045 = dma.hbm_to_vmem [thread:$0]  (!%p2460_p11), %s2817_s8, 512, %s415_s25, [#allocation7], %s2313_s20, %s2313_s20, %s2314_s24  }
  0x2c   : > { %s2821_s26 = scalar_select %p2484_p0, 1, 0 }
  0x2d   : > { %p2058_p11 = scmp.lt.s32.totalorder %s2310_s18, 2  ;;  %s443_s22 = sand.u32 1, %s2298_s15  }
  0x2e   : > { %2822 = sst [smem:[#allocation19_spill]] %s2821_s26  ;;  %s1847_s25 = sshll.u32 %s443_s22, 3 }
  0x2f   : > { %s2493_s20 = scalar_select %p52_p3, %s2298_s15, %s54_s28  }
  0x30   : > { %s1848_s24 = sshll.u32 %s2306_s17, 7  ;;  %s447_s16 = scalar_lea.vmem [#allocation3], %s1847_s25 }
  0x31   : > { %s453_s12 = scalar_lea.hbm %s2781_s0, %s1848_s24  ;;  %s455_s11 = sshll.u32 %s447_s16, 4  ;;  %s456_s11 = int_to_ptr.vmem [resolvable:$true] %s455_s11 }
  0x32   : > { %p2501_p5 = pnand %p2058_p11, %p2478_p12  ;;  %s2508_s28 = scalar_lea.hbm %s2782_s1, %s1848_s24 }
  0x33   : > { %s462_s29 = sand.u32 1, %s2310_s18   ;;  %s444_s17 = scalar_lea.sflag [#allocation4], %s443_s22 }
  0x34   : > { %p2168_p7 = pneg %p2501_p5  ;;  %s2179_s8 = scalar_lea.vmem %s456_s11, 128 }
  0x35   : > { %p2180_p2 = scmp.ne.s32.totalorder %s456_s11, %s2179_s8  ;;  %s2315_s13 = smov [#allocation3]  }
  0x36   : > { %s2184_s14 = sshll.u32 %s2315_s13, 4  ;;  %s2185_s14 = int_to_ptr.vmem [resolvable:$false] %s2184_s14 }
  0x37   : > { %p2182_p6 = pnand %p2180_p2, %p2168_p7  ;;  %s2186_s16 = scalar_lea.vmem %s2185_s14, 256 }
  0x38   : > { %p2187_p12 = scmp.lt.s32.totalorder %s456_s11, %s2185_s14  ;;  %p2188_p13 = scmp.lt.s32.totalorder %s2186_s16, %s2179_s8 }
  0x39   : > { %p2183_p9 = pneg %p2182_p6 }
  0x3a   : > { %p2189_p11 = por %p2188_p13, %p2187_p12 }
  0x3c   : > { %p2190_p3 = pnand %p2189_p11, %p2183_p9 }
  0x3e   : > { %2193 = shalt.err (!%p2190_p3)
}
  0x3f   : > { %2049 = dma.hbm_to_vmem [thread:$0]  (!%p2501_p5), %s453_s12, 128, %s456_s11, %s444_s17  }
  0x40   : > { %s466_s27 = scalar_lea.vmem [#allocation6], %s1847_s25  ;;  %s463_s22 = scalar_lea.sflag [#allocation7], %s462_s29 }
  0x41   : > { %s473_s26 = sshll.u32 %s466_s27, 4  ;;  %s2316_s13 = smov [#allocation6]   ;;  %s474_s26 = int_to_ptr.vmem [resolvable:$true] %s473_s26 }
  0x42   : > { %s2207_s24 = scalar_lea.vmem %s474_s26, 128  ;;  %s2212_s14 = sshll.u32 %s2316_s13, 4  ;;  %s2213_s14 = int_to_ptr.vmem [resolvable:$false] %s2212_s14 }
  0x43   : > { %p2208_p2 = scmp.ne.s32.totalorder %s474_s26, %s2207_s24  ;;  %s2214_s8 = scalar_lea.vmem %s2213_s14, 256 }
  0x44   : > { %p2215_p9 = scmp.lt.s32.totalorder %s474_s26, %s2213_s14  ;;  %p2216_p12 = scmp.lt.s32.totalorder %s2214_s8, %s2207_s24 }
  0x45   : > { %p2210_p6 = pnand %p2208_p2, %p2168_p7 }
  0x46   : > { %p2217_p13 = por %p2216_p12, %p2215_p9 }
  0x47   : > { %p2211_p10 = pneg %p2210_p6 }
  0x49   : > { %p2218_p11 = pnand %p2217_p13, %p2211_p10 }
  0x4b   : > { %2221 = shalt.err (!%p2218_p11)
}
  0x4c   : > { %2052 = dma.hbm_to_vmem [thread:$0]  (!%p2501_p5), %s2508_s28, 128, %s474_s26, %s463_s22  }
  0x4d   : > { %482 = sbr.rel (%p2451_p8) target bundleno = 2271 (0x8df), region = 76  ;;  %s2527_s11 = sand.u32 (!%p2451_p8), 1, %s2294_s30  }
  0x4e   : > { %s2530_s12 = sshll.u32 (!%p2451_p8), %s2527_s11, 3  ;;  %s485_s17 = scalar_lea.sflag (!%p2451_p8), [#allocation4], %s2527_s11 }
  0x4f   : > { %s488_s25 = scalar_lea.vmem (!%p2451_p8), [#allocation3], %s2530_s12 }
  0x52   : > { %2273 = dma.done.wait (%p2441_p4), %s485_s17, 128  }
  0x53   : > { %2275 = vsyncadd (%p2441_p4), %s485_s17, 4294967168  ;;  %s493_s9 = sand.u32 1, %s2432_s19   ;;  %s497_s28 = scalar_lea.vmem [#allocation6], %s2530_s12 }
  0x54   : > { %s494_s23 = scalar_lea.sflag [#allocation7], %s493_s9 }
  0x55   : > { %2277 = dma.done.wait (%p2441_p4), %s494_s23, 128  }
  0x56   : > { %2279 = vsyncadd (%p2441_p4), %s494_s23, 4294967168 }
  0x57   : > { %2281 = dma.done.wait (%p68_p1), [#allocation7], 512  }
  0x58   : > { %2283 = vsyncadd (%p68_p1), [#allocation7], 4294966784  ;;  %v2317_v0 = vmov 0.0   ;;  %vm2318_vm0 = vmmov 0   ;;  %v556_v1 = vld [vmem:[%s2783_s2 + $0x18] sm:$0xff]  ;;  %v555_v3 = vld [vmem:[%s2783_s2 + $0x10] sm:$0xff] }
  0x59   : > { %1929 = vmatprep.subr.mxu0 %v2317_v0  ;;  %1940 = vmatprep.subr.mxu1 %v2317_v0  ;;  %v635_v2 = vld [vmem:[%s2784_s3 + $0x18] sm:$0xff]  ;;  %v634_v4 = vld [vmem:[%s2784_s3 + $0x10] sm:$0xff]  ;;  %v554_v5 = vld [vmem:[%s2783_s2 + $0x8] sm:$0xff]  ;;  %vm557_vm1 = vcmask 261120   ;;  %vm790_vm2 = vcmask 64512   ;;  %s2319_s13 = smov 112  }
  0x5a   : > { %1937 = vmatprep.mubr.msk.f32.mxu0 %vm2318_vm0, %v2317_v0  ;;  %1948 = vmatprep.mubr.msk.f32.mxu1 %vm2318_vm0, %v2317_v0  ;;  %v633_v6 = vld [vmem:[%s2784_s3 + $0x8] sm:$0xff]  ;;  %v553_v7 = vld [vmem:[%s2783_s2] sm:$0xff]  ;;  %v712_v11 = vld [vmem:[%s2785_s4 + $0x18] sm:$0xff]  ;;  %s2320_s14 = smov 120   ;;  %s2321_s9 = smov 104   ;;  %vm1128_vm3 = vcmask 130112  }
  0x5b   : > { %1930 = vmatpush3.msra.mxu0 %v556_v1  ;;  %1941 = vmatpush3.msra.mxu1 %v635_v2  ;;  %v632_v8 = vld [vmem:[%s2784_s3] sm:$0xff]  ;;  %v2584_v9 = vld [vmem:[%s488_s25] sm:$0xff]  ;;  %s2322_s23 = smov 8   ;;  %s2323_s21 = smov 16   ;;  %vm1302_vm4 = vcmask 195712   ;;  %vm1476_vm5 = vcmask 261312  }
  0x5c   : > { %1931 = vmatprep.subr.mxu0 %v2317_v0  ;;  %1942 = vmatprep.subr.mxu1 %v2317_v0  ;;  %v552_v10 = vld [vmem:[%s497_s28] sm:$0xff]  ;;  %v711_v12 = vld [vmem:[%s2785_s4 + $0x10] sm:$0xff]  ;;  %v710_v13 = vld [vmem:[%s2785_s4 + $0x8] sm:$0xff]  ;;  %s2324_s29 = smov 24   ;;  %s2824_s22 = sld [smem:[#allocation21_spill]]  ;;  %vm1610_vm6 = vcmask 523264  }
  0x5d   : > { %1932 = vmatpush3.msra.mxu0 %v555_v3  ;;  %1943 = vmatpush3.msra.mxu1 %v634_v4  ;;  %v709_v14 = vld [vmem:[%s2785_s4] sm:$0xff]  ;;  %s2826_s8 = sld [smem:[#allocation15_spill]]  ;;  %s550_s19 = scalar_lea.vmem [#allocation9], %s2530_s12 }
  0x5e   : > { %1933 = vmatprep.subr.mxu0 %v2317_v0  ;;  %1944 = vmatprep.subr.mxu1 %v2317_v0  ;;  %v1858_v20 = vld [vmem:[%s2786_s5] ss:$0 sm:$0xff]  ;;  %s2829_s27 = sld [smem:[#allocation24_spill]]  ;;  %s1730_s28 = sshll.u32 %s550_s19, 4  ;;  %s1731_s28 = int_to_ptr.vmem [resolvable:$true] %s1730_s28 }
  0x5f   : > { %1934 = vmatpush3.msra.mxu0 %v554_v5  ;;  %1945 = vmatpush3.msra.mxu1 %v633_v6  ;;  %s2830_s24 = sld [smem:[#allocation25_spill]] }
  0x60   : > { %1935 = vmatprep.subr.mxu0 %v2317_v0  ;;  %1946 = vmatprep.subr.mxu1 %v2317_v0 }
  0x61   : > { %1936 = vmatpush3.msra.mxu0 %v553_v7  ;;  %1947 = vmatpush3.msra.mxu1 %v632_v8 }
  0x62   : > { %1938 = vmatmul.mubr.msk.f32.vlgmr.msra.gmra.mxu0 %vm557_vm1, %v2584_v9  ;;  %1949 = vmatmul.mubr.msk.f32.vlgmr.msra.gmra.mxu1 %vm557_vm1, %v552_v10 }
  0x63   : > { %1951 = vmatprep.subr.mxu0 %v2317_v0  ;;  %1959 = vmatprep.mubr.msk.f32.mxu0 %vm2318_vm0, %v2317_v0  ;;  %s1881_s25 = sshll.u32 %s2826_s8, 7 }
  0x64   : > { %1952 = vmatpush3.msra.mxu0 %v712_v11  ;;  %1967 = vmatprep.subr.mxu1 %v2317_v0 }
  0x65   : > { %1953 = vmatprep.subr.mxu0 %v2317_v0  ;;  %1969 = vmatprep.mubr.msk.f32.mxu1 %vm2318_vm0, %v2317_v0 }
  0x66   : > { %1954 = vmatpush3.msra.mxu0 %v711_v12 }
  0x67   : > { %1955 = vmatprep.subr.mxu0 %v2317_v0 }
  0x68   : > { %1956 = vmatpush3.msra.mxu0 %v710_v13 }
  0x69   : > { %1957 = vmatprep.subr.mxu0 %v2317_v0 }
  0x6a   : > { %1958 = vmatpush3.msra.mxu0 %v709_v14 }
  0x6b   : > { %1960 = vmatmul.mubr.msk.f32.vlgmr.msra.gmra.mxu0 %vm557_vm1, %v552_v10  ;;  %1962 = vmatprep.subr.mxu0 %v2317_v0 }
  0x6c   : > { %1964 = vmatprep.mubr.msk.f32.mxu0 %vm2318_vm0, %v2317_v0 }
 0x122   : > { %v627_v15 = vpop.f32.mrf.mxu0  ;;  %v705_v16 = vpop.f32.mrf.mxu1 }
 0x123   : > { %v631_v17 = vmul.f32 0.35355338, %v627_v15  ;;  %1132 = vrot.lane.b32.xlu1 %v705_v16, %s2319_s13  ;;  %957 = vrot.lane.b32.xlu0 %v705_v16, %s2320_s14 }
 0x124   : > { %1963 = vmatpush3.xpose.msk.msra.mxu0 %vm790_vm2, %v705_v16  ;;  %v1939_v18 = vpop.f32.mrf.mxu0  ;;  %v1950_v19 = vpop.f32.mrf.mxu1 }
 0x125   : > { %1972 = vmatprep.subr.mxu0 %v2317_v0 }
 0x127   : > { %1965 = vmatmul.mubr.msk.f32.vlgmr.msra.gmra.mxu0 %vm790_vm2, %v631_v17  ;;  %1130 = vrot.lane.b32.xlu1 %v631_v17, %s2319_s13 }
 0x128   : > { %955 = vrot.lane.b32.xlu0 %v631_v17, %s2320_s14  ;;  %1974 = vmatprep.mubr.msk.f32.mxu0 %vm2318_vm0, %v2317_v0 }
 0x12b   : > { %1304 = vrot.lane.b32.xlu1 %v631_v17, %s2321_s9  ;;  %v786_v21 = vpop.f32.mrf.mxu0 }
 0x12c   : > { %1306 = vrot.lane.b32.xlu0 %v705_v16, %s2321_s9  ;;  %v2632_v22 = vadd.f32 %v1858_v20, %v786_v21 }
 0x12d   : > { %v1961_v23 = vpop.f32.mrf.mxu0 }
 0x12e   : > { %1968 = vmatpush3.msra.mxu1 %v2632_v22 }
 0x12f   : > { %1977 = vmatprep.subr.mxu1 %v2317_v0 }
 0x195   : > { %v958_v24 = vpop.permute.xlu0 %957  ;;  %v1133_v25 = vpop.permute.xlu1 %1132 }
 0x196   : > { %1973 = vmatpush3.xpose.msk.msra.mxu0 %vm790_vm2, %v958_v24 }
 0x197   : > { %1982 = vmatprep.subr.mxu0 %v2317_v0 }
 0x199   : > { %v1131_v27 = vpop.permute.xlu1 %1130 }
 0x19a   : > { %v956_v26 = vpop.permute.xlu0 %955 }
 0x19b   : > { %1975 = vmatmul.mubr.msk.f32.vlgmr.msra.gmra.mxu0 %vm790_vm2, %v956_v26 }
 0x19c   : > { %1983 = vmatpush3.xpose.msk.msra.mxu0 %vm790_vm2, %v1133_v25  ;;  %1984 = vmatprep.mubr.msk.f32.mxu0 %vm2318_vm0, %v2317_v0 }
 0x19d   : > { %1992 = vmatprep.subr.mxu0 %v2317_v0  ;;  %v1305_v29 = vpop.permute.xlu1 %1304 }
 0x19e   : > { %v1307_v28 = vpop.permute.xlu0 %1306 }
 0x19f   : > { %1985 = vmatmul.mubr.msk.f32.vlgmr.msra.gmra.mxu0 %vm790_vm2, %v1131_v27 }
 0x1a0   : > { %1993 = vmatpush3.xpose.msk.msra.mxu0 %vm790_vm2, %v1307_v28  ;;  %1994 = vmatprep.mubr.msk.f32.mxu0 %vm2318_vm0, %v2317_v0 }
 0x1a1   : > { %2002 = vmatprep.subr.mxu0 %v2317_v0 }
 0x1a3   : > { %1995 = vmatmul.mubr.msk.f32.vlgmr.msra.gmra.mxu0 %vm790_vm2, %v1305_v29 }
 0x1a4   : > { %2010 = vmatprep.mubr.msk.f32.mxu0 %vm2318_vm0, %v2317_v0 }
 0x1e7   : > { %v863_v30 = vpop.f32.mrf.mxu0 }
 0x1e8   : > { %v867_v31 = vsel %vm790_vm2, %v863_v30, -inf }
 0x1e9   : > { %868 = vmax.xlane.f32.xlu0 %v867_v31  ;;  %v1966_v32 = vpop.f32.mrf.mxu0 }
 0x25b   : > { %v1029_v33 = vpop.f32.mrf.mxu0 }
 0x25c   : > { %v1033_v34 = vsel %vm790_vm2, %v1029_v33, -inf }
 0x25d   : > { %1034 = vmax.xlane.f32.xlu1 %v1033_v34  ;;  %v1976_v35 = vpop.f32.mrf.mxu0 }
 0x25f   : > { %v1204_v36 = vpop.f32.mrf.mxu0 }
 0x260   : > { %v1208_v37 = vsel %vm790_vm2, %v1204_v36, -inf }
 0x261   : > { %1209 = vmax.xlane.f32.xlu0 %v1208_v37  ;;  %v1986_v38 = vpop.f32.mrf.mxu0 }
 0x263   : > { %v1378_v39 = vpop.f32.mrf.mxu0 }
 0x264   : > { %v1382_v40 = vsel %vm790_vm2, %v1378_v39, -inf }
 0x265   : > { %1383 = vmax.xlane.f32.xlu0 %v1382_v40  ;;  %v1996_v41 = vpop.f32.mrf.mxu0 }
 0x272   : > { %v869_v42 = vpop.xlane.xlu0 %868 }
 0x273   : > { %v870_v43 = vsub.f32 %v863_v30, %v869_v42 }
 0x275   : > { %v871_v44 = vmul.f32 1.442695, %v870_v43 }
 0x277   : > { %2120 = vpow2.f32 %v871_v44 }
 0x284   : > { %v2121_v45 = vpop.eup %2120 }
 0x285   : > { %v873_v46 = vsel %vm790_vm2, %v2121_v45, 0.0 }
 0x286   : > { %874 = vadd.xlane.f32.xlu1 %v873_v46  ;;  %v1513_v46 = vld [vmem:[#allocation8 + $0x18] sm:$0xff] }
 0x287   : > { %2003 = vmatpush3.msra.mxu0 %v1513_v46 }
 0x288   : > { %2004 = vmatprep.subr.mxu0 %v2317_v0 }
 0x2e6   : > { %v1035_v47 = vpop.xlane.xlu1 %1034 }
 0x2e7   : > { %v1036_v48 = vsub.f32 %v1029_v33, %v1035_v47  ;;  %v1512_v47 = vld [vmem:[#allocation8 + $0x10] sm:$0xff] }
 0x2e8   : > { %2005 = vmatpush3.msra.mxu0 %v1512_v47 }
 0x2e9   : > { %v1037_v49 = vmul.f32 1.442695, %v1036_v48  ;;  %v1511_v48 = vld [vmem:[#allocation8 + $0x8] sm:$0xff]  ;;  %2006 = vmatprep.subr.mxu0 %v2317_v0 }
 0x2ea   : > { %v1210_v50 = vpop.xlane.xlu0 %1209  ;;  %2007 = vmatpush3.msra.mxu0 %v1511_v48 }
 0x2eb   : > { %2122 = vpow2.f32 %v1037_v49  ;;  %v1211_v51 = vsub.f32 %v1204_v36, %v1210_v50  ;;  %2008 = vmatprep.subr.mxu0 %v2317_v0  ;;  %v1602_v49 = vld [vmem:[%s2791_s10 + $0x38] sm:$0xff]  ;;  %v1601_v50 = vld [vmem:[%s2791_s10 + $0x30] sm:$0xff] }
 0x2ed   : > { %v1212_v52 = vmul.f32 1.442695, %v1211_v51  ;;  %v1600_v51 = vld [vmem:[%s2791_s10 + $0x28] sm:$0xff] }
 0x2ee   : > { %v1384_v53 = vpop.xlane.xlu0 %1383 }
 0x2ef   : > { %2124 = vpow2.f32 %v1212_v52  ;;  %v1385_v54 = vsub.f32 %v1378_v39, %v1384_v53  ;;  %v1599_v52 = vld [vmem:[%s2791_s10 + $0x20] sm:$0xff]  ;;  %v1598_v53 = vld [vmem:[%s2791_s10 + $0x18] sm:$0xff] }
 0x2f1   : > { %v1386_v55 = vmul.f32 1.442695, %v1385_v54 }
 0x2f3   : > { %2126 = vpow2.f32 %v1386_v55 }
 0x2f8   : > { %v2123_v56 = vpop.eup %2122 }
 0x2f9   : > { %v1039_v57 = vsel %vm790_vm2, %v2123_v56, 0.0 }
 0x2fa   : > { %1040 = vadd.xlane.f32.xlu0 %v1039_v57 }
 0x2fc   : > { %v2125_v58 = vpop.eup %2124 }
 0x2fd   : > { %v1214_v59 = vsel %vm790_vm2, %v2125_v58, 0.0 }
 0x2fe   : > { %1215 = vadd.xlane.f32.xlu1 %v1214_v59 }
 0x300   : > { %v2127_v60 = vpop.eup %2126 }
 0x301   : > { %v1388_v61 = vsel %vm790_vm2, %v2127_v60, 0.0 }
 0x302   : > { %1389 = vadd.xlane.f32.xlu0 %v1388_v61 }
 0x30f   : > { %v875_v62 = vpop.xlane.xlu1 %874  ;;  %1048 = vrot.lane.b32.xlu1 %v2632_v22, %s2320_s14  ;;  %s2825_s14 = sld [smem:[#allocation22_spill]] }
 0x310   : > { %2128 = vrcp.f32 %v875_v62 }
 0x313   : > { %1396 = vrot.lane.b32.xlu1 %v2632_v22, %s2321_s9  ;;  %s2222_s9 = scalar_lea.vmem %s1731_s28, 128 }
 0x314   : > { %p2223_p1 = scmp.ne.s32.totalorder %s1731_s28, %s2222_s9 }
 0x316   : > { %p2224_p4 = pnand %p2223_p1, %p2484_p0 }
 0x318   : > { %1222 = vrot.lane.b32.xlu0 %v2632_v22, %s2319_s13  ;;  %s1728_s13 = scalar_lea.hbm %s2830_s24, %s1881_s25  ;;  %p2225_p8 = pneg %p2224_p4 }
 0x31d   : > { %v2129_v63 = vpop.eup %2128 }
 0x31e   : > { %v877_v1 = vmul.f32 %v2129_v63, %v875_v62 }
 0x320   : > { %v878_v2 = vsub.f32 2.0, %v877_v1  ;;  %v1596_v1 = vld [vmem:[%s2791_s10 + $0x8] sm:$0xff] }
 0x322   : > { %v879_v3 = vmul.f32 %v2129_v63, %v878_v2  ;;  %v1597_v63 = vld [vmem:[%s2791_s10 + $0x10] sm:$0xff]  ;;  %v1595_v2 = vld [vmem:[%s2791_s10] sm:$0xff] }
 0x324   : > { %v880_v4 = vmul.f32 %v2121_v45, %v879_v3  ;;  %v1874_v3 = vld [vmem:[%s2824_s22] ss:$0 sm:$0xff] }
 0x326   : > { %1970 = vmatmul.mubr.msk.f32.vlgmr.msra.gmra.mxu1 %vm790_vm2, %v880_v4 }
 0x327   : > { %1979 = vmatprep.mubr.msk.f32.mxu1 %vm2318_vm0, %v2317_v0 }
 0x383   : > { %v1041_v5 = vpop.xlane.xlu0 %1040 }
 0x384   : > { %2130 = vrcp.f32 %v1041_v5 }
 0x387   : > { %v1216_v6 = vpop.xlane.xlu1 %1215 }
 0x388   : > { %2132 = vrcp.f32 %v1216_v6 }
 0x38b   : > { %v1049_v7 = vpop.permute.xlu1 %1048  ;;  %v1390_v8 = vpop.xlane.xlu0 %1389 }
 0x38c   : > { %2134 = vrcp.f32 %v1390_v8  ;;  %1978 = vmatpush3.msra.mxu1 %v1049_v7 }
 0x38d   : > { %1987 = vmatprep.subr.mxu1 %v2317_v0 }
 0x38f   : > { %v1223_v21 = vpop.permute.xlu0 %1222  ;;  %v1397_v25 = vpop.permute.xlu1 %1396 }
 0x391   : > { %v2131_v10 = vpop.eup %2130 }
 0x392   : > { %v1043_v11 = vmul.f32 %v2131_v10, %v1041_v5 }
 0x394   : > { %v1044_v12 = vsub.f32 2.0, %v1043_v11 }
 0x395   : > { %v2133_v13 = vpop.eup %2132 }
 0x396   : > { %v1045_v14 = vmul.f32 %v2131_v10, %v1044_v12  ;;  %v1218_v15 = vmul.f32 %v2133_v13, %v1216_v6 }
 0x398   : > { %v1046_v16 = vmul.f32 %v2123_v56, %v1045_v14  ;;  %v1219_v17 = vsub.f32 2.0, %v1218_v15 }
 0x399   : > { %v2135_v18 = vpop.eup %2134 }
 0x39a   : > { %v1220_v19 = vmul.f32 %v2133_v13, %v1219_v17  ;;  %v1392_v20 = vmul.f32 %v2135_v18, %v1390_v8  ;;  %1980 = vmatmul.mubr.msk.f32.vlgmr.msra.gmra.mxu1 %vm790_vm2, %v1046_v16  ;;  %v1876_v8 = vld [vmem:[%s2825_s14] ss:$0 sm:$0xff]  ;;  %s1716_s14 = scalar_lea.sflag [#allocation5], %s2527_s11 }
 0x39b   : > { %1988 = vmatpush3.msra.mxu1 %v1223_v21  ;;  %1989 = vmatprep.mubr.msk.f32.mxu1 %vm2318_vm0, %v2317_v0 }
 0x39c   : > { %v1221_v22 = vmul.f32 %v2125_v58, %v1220_v19  ;;  %v1393_v23 = vsub.f32 2.0, %v1392_v20  ;;  %1997 = vmatprep.subr.mxu1 %v2317_v0  ;;  %v1872_v58 = vld [vmem:[%s2787_s6] ss:$0 sm:$0xff] }
 0x39e   : > { %v1394_v24 = vmul.f32 %v2135_v18, %v1393_v23  ;;  %1990 = vmatmul.mubr.msk.f32.vlgmr.msra.gmra.mxu1 %vm790_vm2, %v1221_v22 }
 0x39f   : > { %1998 = vmatpush3.msra.mxu1 %v1397_v25  ;;  %1999 = vmatprep.mubr.msk.f32.mxu1 %vm2318_vm0, %v2317_v0  ;;  %v1879_v25 = vld [vmem:[%s2829_s27] ss:$0 sm:$0xff] }
 0x3a0   : > { %v1395_v26 = vmul.f32 %v2127_v60, %v1394_v24  ;;  %2013 = vmatprep.subr.mxu1 %v2317_v0  ;;  %v1873_v60 = vld [vmem:[%s2788_s7] ss:$0 sm:$0xff] }
 0x3a2   : > { %2000 = vmatmul.mubr.msk.f32.vlgmr.msra.gmra.mxu1 %vm790_vm2, %v1395_v26 }
 0x3a3   : > { %2029 = vmatprep.mubr.msk.f32.mxu1 %vm2318_vm0, %v2317_v0  ;;  %2014 = vmatpush3.msra.mxu1 %v1602_v49 }
 0x3a4   : > { %2015 = vmatprep.subr.mxu1 %v2317_v0 }
 0x3a5   : > { %2016 = vmatpush3.msra.mxu1 %v1601_v50 }
 0x3a6   : > { %2017 = vmatprep.subr.mxu1 %v2317_v0 }
 0x3a7   : > { %2018 = vmatpush3.msra.mxu1 %v1600_v51 }
 0x3a8   : > { %2019 = vmatprep.subr.mxu1 %v2317_v0 }
 0x3a9   : > { %2020 = vmatpush3.msra.mxu1 %v1599_v52 }
 0x3aa   : > { %2021 = vmatprep.subr.mxu1 %v2317_v0 }
 0x3ab   : > { %2022 = vmatpush3.msra.mxu1 %v1598_v53 }
 0x3ac   : > { %2023 = vmatprep.subr.mxu1 %v2317_v0 }
 0x3ad   : > { %2024 = vmatpush3.msra.mxu1 %v1597_v63 }
 0x3ae   : > { %2025 = vmatprep.subr.mxu1 %v2317_v0 }
 0x3af   : > { %2026 = vmatpush3.msra.mxu1 %v1596_v1 }
 0x3b0   : > { %2027 = vmatprep.subr.mxu1 %v2317_v0 }
 0x3b1   : > { %2028 = vmatpush3.msra.mxu1 %v1595_v2 }
 0x3e6   : > { %v950_v27 = vpop.f32.mrf.mxu1 }
 0x3e7   : > { %954 = vst.msk [vmem:[#allocation2] sm:$0xff] %vm790_vm2, %v950_v27 }
 0x3e8   : > { %v1971_v28 = vpop.f32.mrf.mxu1 }
 0x45a   : > { %v1120_v29 = vpop.f32.mrf.mxu1 }
 0x45b   : > { %1125 = vrot.lane.b32.xlu1 %v1120_v29, %s2322_s23  ;;  %s2325_s23 = smov [#allocation9]  }
 0x45c   : > { %v1981_v30 = vpop.f32.mrf.mxu1 }
 0x45e   : > { %v1294_v31 = vpop.f32.mrf.mxu1 }
 0x45f   : > { %1299 = vrot.lane.b32.xlu0 %v1294_v31, %s2323_s21  ;;  %s2828_s21 = sld [smem:[#allocation23_spill]] }
 0x460   : > { %v1991_v32 = vpop.f32.mrf.mxu1 }
 0x462   : > { %v1468_v33 = vpop.f32.mrf.mxu1 }
 0x463   : > { %1473 = vrot.lane.b32.xlu1 %v1468_v33, %s2324_s29 }
 0x464   : > { %v2001_v34 = vpop.f32.mrf.mxu1 }
 0x465   : > { %v1878_v23 = vld [vmem:[%s2828_s21] ss:$0 sm:$0xff]  ;;  %s2226_s21 = sshll.u32 %s2325_s23, 4  ;;  %s2227_s21 = int_to_ptr.vmem [resolvable:$false] %s2226_s21 }
 0x466   : > { %s2228_s12 = scalar_lea.vmem %s2227_s21, 256  ;;  %p2229_p10 = scmp.lt.s32.totalorder %s1731_s28, %s2227_s21 }
 0x467   : > { %p2230_p5 = scmp.lt.s32.totalorder %s2228_s12, %s2222_s9 }
 0x469   : > { %p2231_p7 = por %p2230_p5, %p2229_p10 }
 0x46b   : > { %p2232_p3 = pnand %p2231_p7, %p2225_p8 }
 0x4cd   : > { %v1126_v35 = vpop.permute.xlu1 %1125 }
 0x4ce   : > { %1129 = vst.msk [vmem:[#allocation2] sm:$0xff] %vm1128_vm3, %v1126_v35 }
 0x4d1   : > { %v1300_v36 = vpop.permute.xlu0 %1299 }
 0x4d2   : > { %1303 = vst.msk [vmem:[#allocation2] sm:$0xff] %vm1302_vm4, %v1300_v36 }
 0x4d5   : > { %v1474_v37 = vpop.permute.xlu1 %1473 }
 0x4d6   : > { %1477 = vst.msk [vmem:[#allocation2] sm:$0xff] %vm1476_vm5, %v1474_v37 }
 0x4dd   : > { %v1478_v38 = vld [vmem:[#allocation2] sm:$0xff] }
 0x4de   : > { %v1479_v39 = vadd.f32 %v1478_v38, %v2584_v9  ;;  %v1510_v9 = vld [vmem:[#allocation8] sm:$0xff] }
 0x4df   : > { %2009 = vmatpush3.msra.mxu0 %v1510_v9 }
 0x4e0   : > { %v1482_v40 = vsel %vm557_vm1, %v1479_v39, 0.0 }
 0x4e1   : > { %1483 = vadd.xlane.f32.xlu0 %v1482_v40 }
 0x56a   : > { %v1484_v41 = vpop.xlane.xlu0 %1483 }
 0x56b   : > { %v1486_v42 = vmul.f32 0.03125, %v1484_v41 }
 0x56d   : > { %v1487_v43 = vsub.f32 %v1479_v39, %v1486_v42 }
 0x56f   : > { %v1488_v44 = vmul.f32 %v1487_v43, %v1487_v43 }
 0x571   : > { %v1489_v45 = vsel %vm557_vm1, %v1488_v44, 0.0 }
 0x572   : > { %1490 = vadd.xlane.f32.xlu1 %v1489_v45 }
 0x5fb   : > { %v1491_v54 = vpop.xlane.xlu1 %1490 }
 0x5fc   : > { %v1492_v55 = vmul.f32 0.03125, %v1491_v54 }
 0x5fe   : > { %v1493_v56 = vadd.f32 1e-05, %v1492_v55 }
 0x600   : > { %2136 = vrsqrt.f32 %v1493_v56 }
 0x60d   : > { %v2137_v57 = vpop.eup %2136 }
 0x60e   : > { %v1495_v59 = vmul.f32 %v2137_v57, %v1487_v43 }
 0x610   : > { %v1502_v61 = vmul.f32 %v1872_v58, %v1495_v59 }
 0x612   : > { %v1509_v62 = vadd.f32 %v1873_v60, %v1502_v61 }
 0x614   : > { %2011 = vmatmul.mubr.msk.f32.vlgmr.msra.gmra.mxu0 %vm557_vm1, %v1509_v62 }
 0x6d4   : > { %v1590_v4 = vpop.f32.mrf.mxu0 }
 0x6d5   : > { %v1591_v5 = vadd.f32 %v1874_v3, %v1590_v4 }
 0x6d6   : > { %v2012_v6 = vpop.f32.mrf.mxu0 }
 0x6d7   : > { %v1594_v7 = vmax.f32 %v1591_v5, 0.0 }
 0x6d9   : > { %2030 = vmatmul.mubr.msk.f32.vlgmr.msra.gmra.mxu1 %vm1610_vm6, %v1594_v7 }
 0x799   : > { %v1680_v10 = vpop.f32.mrf.mxu1 }
 0x79a   : > { %v1681_v11 = vadd.f32 %v1876_v8, %v1680_v10 }
 0x79b   : > { %v2031_v12 = vpop.f32.mrf.mxu1 }
 0x79c   : > { %v1684_v13 = vadd.f32 %v1681_v11, %v1509_v62 }
 0x79e   : > { %v1687_v0 = vsel %vm557_vm1, %v1684_v13, 0.0 }
 0x79f   : > { %1688 = vadd.xlane.f32.xlu0 %v1687_v0 }
 0x828   : > { %v1689_v14 = vpop.xlane.xlu0 %1688 }
 0x829   : > { %v1690_v15 = vmul.f32 0.03125, %v1689_v14 }
 0x82b   : > { %v1691_v16 = vsub.f32 %v1684_v13, %v1690_v15 }
 0x82d   : > { %v1692_v17 = vmul.f32 %v1691_v16, %v1691_v16 }
 0x82f   : > { %v1693_v18 = vsel %vm557_vm1, %v1692_v17, 0.0 }
 0x830   : > { %1694 = vadd.xlane.f32.xlu0 %v1693_v18 }
 0x8b9   : > { %v1695_v19 = vpop.xlane.xlu0 %1694 }
 0x8ba   : > { %v1696_v20 = vmul.f32 0.03125, %v1695_v19 }
 0x8bc   : > { %v1697_v21 = vadd.f32 1e-05, %v1696_v20 }
 0x8be   : > { %2138 = vrsqrt.f32 %v1697_v21 }
 0x8cb   : > { %v2139_v22 = vpop.eup %2138 }
 0x8cc   : > { %v1699_v24 = vmul.f32 %v2139_v22, %v1691_v16 }
 0x8ce   : > { %v1706_v26 = vmul.f32 %v1878_v23, %v1699_v24 }
 0x8d0   : > { %v1713_v27 = vadd.f32 %v1879_v25, %v1706_v26 }
 0x8d2   : > { %1714 = vst.msk [vmem:[%s550_s19] sm:$0xff] %vm557_vm1, %v1713_v27 }
 0x8d3   : > { %2235 = shalt.err (!%p2232_p3)
}
 0x8d4   : > { %s2236_s8 = scalar_lea.hbm %s1728_s13, 128  ;;  %s2240_s16 = scalar_lea.hbm %s2830_s24, 256 }
 0x8d5   : > { %p2237_p2 = scmp.ne.s32.totalorder %s1728_s13, %s2236_s8  ;;  %p2241_p12 = scmp.lt.s32.totalorder %s1728_s13, %s2830_s24 }
 0x8d6   : > { %p2242_p13 = scmp.lt.s32.totalorder %s2240_s16, %s2236_s8 }
 0x8d7   : > { %p2238_p6 = pnand %p2237_p2, %p2484_p0 }
 0x8d8   : > { %p2243_p11 = por %p2242_p13, %p2241_p12 }
 0x8d9   : > { %p2239_p9 = pneg %p2238_p6 }
 0x8db   : > { %p2244_p1 = pnand %p2243_p11, %p2239_p9 }
 0x8dd   : > { %2247 = shalt.err (!%p2244_p1)
}
 0x8de   : > { %2040 = dma.vmem_to_hbm [thread:$0]  (%p2484_p0), %s1731_s28, 128, %s1728_s13, %s1716_s14  }
 0x8df PF: > { %s2831_s19 = sld [smem:[#allocation14_spill]]  ;;  %p2834_p8 = scmp.ge.s32.totalorder %s2310_s18, 2 }
 0x8e0   : > { %s2832_s26 = sld [smem:[#allocation17_spill]] }
 0x8e5   : > { %s1742_s22 = sand.u32 1, %s2831_s19  }
 0x8e6   : > { %p2833_p4 = scmp.ne.s32.totalorder %s2832_s26, 0  ;;  %s1743_s9 = scalar_lea.sflag [#allocation5], %s1742_s22 }
 0x8e8   : > { %p2054_p10 = pnand %p2834_p8, %p2833_p4 }
 0x8ea   : > { %p2055_p5 = pneg %p2054_p10 }
 0x8ec   : > { %2285 = dma.done.wait (%p2055_p5), %s1743_s9, 128  }
 0x8ed   : > { %2287 = vsyncadd (%p2055_p5), %s1743_s9, 4294967168  ;;  %s33_s18 = sadd.s32 1, %s2310_s18   ;;  %s2835_s16 = sld [smem:[#allocation16_spill]] }
 0x8ee   : > { %p30_p7 = scmp.ge.s32.totalorder %s33_s18, 4   ;;  %s2836_s17 = sld [smem:[#allocation18_spill]] }
 0x8ef   : > { %s2837_s29 = smov %s2294_s30  ;;  %s2838_s30 = smov %s2298_s15 }
 0x8f0   : > { %s2839_s15 = smov %s2493_s20  ;;  %32 = sbr.rel (!%p30_p7) target bundleno = 15 (0xf), region = 138 }
 0x8f5   :  { %1748 = vsyncpa [#allocation4], 1 }
 0x8f6   :  { %1750 = vsyncpa [#allocation4 + $0x1], 1 }
 0x8f7   :  { %1751 = vsyncpa [#allocation7], 1 }
 0x8f8   :  { %1753 = vsyncpa [#allocation7 + $0x1], 1 }
 0x8f9   :  { %1754 = vsyncpa [#allocation5], 1 }
 0x8fa   :  { %1756 = vsyncpa [#allocation5 + $0x1], 1 }

</bundles_post_ra>
